<compile_context>
chip_gen: v5e
topology: v5e:2x2
jax: 0.10.0
libtpu: 0.0.40
codegen_flags: <defaults>
</compile_context>

<pallas_src>
import jax
import jax.numpy as jnp
from jax.experimental import pallas as pl
from jax.experimental.pallas import tpu as pltpu


def _round_up(n: int, m: int) -> int:
    return (n + m - 1) // m * m


def dqn_kernel(x_ref, w1_ref, b1_ref, w2_ref, b2_ref, w3_ref, b3_ref,
               w4_ref, b4_ref, out_ref):
    """Fused MLP on one batch tile: (((x@W1+b1).relu@W2+b2).relu@W3+b3).relu@W4+b4.

    Weights may be bf16; matmuls accumulate in f32 (preferred_element_type) and all
    elementwise math (bias add, ReLU) is in f32.
    """
    cdt = w1_ref.dtype  # compute dtype for the MXU (f32 or bf16)

    h = jnp.dot(x_ref[...].astype(cdt), w1_ref[...],
                preferred_element_type=jnp.float32) + b1_ref[...]
    h = jnp.maximum(h, 0.0)

    h = jnp.dot(h.astype(cdt), w2_ref[...],
                preferred_element_type=jnp.float32) + b2_ref[...]
    h = jnp.maximum(h, 0.0)

    h = jnp.dot(h.astype(cdt), w3_ref[...],
                preferred_element_type=jnp.float32) + b3_ref[...]
    h = jnp.maximum(h, 0.0)

    out = jnp.dot(h.astype(cdt), w4_ref[...],
                  preferred_element_type=jnp.float32) + b4_ref[...]
    out_ref[...] = out.astype(out_ref.dtype)


def prepare_params(params, *, compute_dtype=jnp.float32, pad_multiple=128):
    """One-time (outside the hot path) transform of PyTorch-convention params.

    - transpose weights (out, in) -> (in, out) so the kernel computes x @ W + b,
    - zero-pad only the HIDDEN dims to a multiple of `pad_multiple` (128 lanes is
      native on v5e/v6e/v7x; only consider 256 if the real fc_dims >= ~192),
    - keep the observation (w1 input) and n_actions (w4 output) dims UNPADDED so
      x streams at its true width and the output is written at its true width,
    - cast weights to `compute_dtype` (e.g. bf16); biases stay f32 as (1, out_p).

    Zero padding is exact: padded hidden weight rows/cols and bias lanes are all 0,
    so padded hidden lanes stay 0 through ReLU and never leak into real lanes.
    """
    def pad_to(n):
        return _round_up(n, pad_multiple)

    obs = params["w1"].shape[1]
    fc = params["w1"].shape[0]
    n_actions = params["w4"].shape[0]
    fc_p = pad_to(fc)

    # (in_padded, out_padded) per layer.
    dims = [(obs, fc_p), (fc_p, fc_p), (fc_p, fc_p), (fc_p, n_actions)]

    prepped = {}
    for i, (in_p, out_p) in enumerate(dims, start=1):
        w = jnp.asarray(params[f"w{i}"], jnp.float32)   # (out, in)  PyTorch layout
        b = jnp.asarray(params[f"b{i}"], jnp.float32)   # (out,)
        out_d, in_d = w.shape
        w_t = jnp.zeros((in_p, out_p), compute_dtype)
        w_t = w_t.at[:in_d, :out_d].set(w.T.astype(compute_dtype))
        b_p = jnp.zeros((1, out_p), jnp.float32)
        b_p = b_p.at[0, :out_d].set(b)
        prepped[f"w{i}"] = w_t
        prepped[f"b{i}"] = b_p
    return prepped


def _choose_batch_tile(B, obs, fc_p, n_actions, x_itemsize, resident_bytes):
    """Pick the batch tile: as large as VMEM comfortably allows, >=2 grid steps
    when the batch permits (so v7x's two TensorCores both get work)."""
    B8 = _round_up(max(B, 1), 8)
    # Streamed / live bytes per batch row: x + out double-buffered plus headroom for
    # ~4 f32 activation copies of width fc_p living in vregs / VMEM spill.
    per_row = 2 * obs * x_itemsize + 2 * n_actions * 4 + 4 * fc_p * 4
    budget = 24 * 1024 * 1024              # stay under the 32 MiB default scoped VMEM
    avail = max(budget - resident_bytes, 1 << 20)
    cap = max(8, min(2048, (avail // per_row) // 8 * 8))
    # At least 2 grid steps when the batch allows it; more when the cap forces it.
    n_steps = max(pl.cdiv(B8, cap), min(2, B8 // 8), 1)
    tb = min(cap, _round_up(pl.cdiv(B8, n_steps), 8))
    return tb, per_row


@jax.jit
def dqn_forward(x, prepped):
    """Run the fused DQN kernel.

    x:       (B, observation_size) float32
    prepped: output of prepare_params (padded, transposed weights; f32 biases)
    returns: (B, n_actions) float32 Q-values
    """
    w1, b1 = prepped["w1"], prepped["b1"]
    w2, b2 = prepped["w2"], prepped["b2"]
    w3, b3 = prepped["w3"], prepped["b3"]
    w4, b4 = prepped["w4"], prepped["b4"]

    obs = w1.shape[0]          # true observation size (unpadded)
    fc_p = w2.shape[0]         # padded hidden width
    n_actions = w4.shape[1]    # true action count (unpadded)

    B, obs_x = x.shape
    assert obs_x == obs, "x feature dim does not match prepared w1"

    resident_bytes = sum(int(a.size) * a.dtype.itemsize
                         for a in (w1, b1, w2, b2, w3, b3, w4, b4))
    TB, per_row = _choose_batch_tile(B, obs, fc_p, n_actions,
                                     x.dtype.itemsize, resident_bytes)
    B_pad = _round_up(B, TB)

    x_p = x if B_pad == B else jnp.pad(x, ((0, B_pad - B), (0, 0)))

    grid = (B_pad // TB,)
    batch_blk = lambda i: (i, 0)   # x / out tiles walk the batch axis
    resident = lambda i: (0, 0)    # weights & biases stay VMEM-resident across steps

    flops = 2 * B_pad * (obs * fc_p + 2 * fc_p * fc_p + fc_p * n_actions)
    bytes_accessed = (int(x_p.size) * x_p.dtype.itemsize
                      + resident_bytes
                      + B_pad * n_actions * 4)

    compiler_kwargs = dict(dimension_semantics=("parallel",))
    est_vmem = resident_bytes + TB * per_row
    if est_vmem > 30 * 1024 * 1024:
        # Large fc_dims: raise the scoped limit.  TODO(synk): for fc_dims >~2K on
        # v7x (64 MiB physical VMEM) prefer bf16 resident weights or a K-tiled grid.
        compiler_kwargs["vmem_limit_bytes"] = int(min(est_vmem * 5 // 4,
                                                      100 * 1024 * 1024))

    out = pl.pallas_call(
        dqn_kernel,
        out_shape=jax.ShapeDtypeStruct((B_pad, n_actions), jnp.float32),
        grid=grid,
        in_specs=[
            pl.BlockSpec((TB, obs), batch_blk),       # x: true feature width
            pl.BlockSpec((obs, fc_p), resident),
            pl.BlockSpec((1, fc_p), resident),
            pl.BlockSpec((fc_p, fc_p), resident),
            pl.BlockSpec((1, fc_p), resident),
            pl.BlockSpec((fc_p, fc_p), resident),
            pl.BlockSpec((1, fc_p), resident),
            pl.BlockSpec((fc_p, n_actions), resident),
            pl.BlockSpec((1, n_actions), resident),
        ],
        out_specs=pl.BlockSpec((TB, n_actions), batch_blk),
        compiler_params=pltpu.CompilerParams(**compiler_kwargs),
        cost_estimate=pl.CostEstimate(
            flops=flops, transcendentals=0, bytes_accessed=bytes_accessed),
    )(x_p, w1, b1, w2, b2, w3, b3, w4, b4)

    return out if B_pad == B else out[:B]


def init_params(key, observation_size, fc_dims, n_actions):
    """Deterministic PyTorch-style uniform(-1/sqrt(fan_in), 1/sqrt(fan_in)) init."""
    dims = [(fc_dims, observation_size),
            (fc_dims, fc_dims),
            (fc_dims, fc_dims),
            (n_actions, fc_dims)]
    params = {}
    for i, (out_d, in_d) in enumerate(dims, start=1):
        key, kw, kb = jax.random.split(key, 3)
        bound = 1.0 / jnp.sqrt(jnp.float32(in_d))
        params[f"w{i}"] = jax.random.uniform(
            kw, (out_d, in_d), jnp.float32, minval=-bound, maxval=bound)
        params[f"b{i}"] = jax.random.uniform(
            kb, (out_d,), jnp.float32, minval=-bound, maxval=bound)
    return params


def dqn_reference(x, params):
    """Pure-JAX reference of the PyTorch forward."""
    h = jnp.maximum(x @ params["w1"].T + params["b1"], 0.0)
    h = jnp.maximum(h @ params["w2"].T + params["b2"], 0.0)
    h = jnp.maximum(h @ params["w3"].T + params["b3"], 0.0)
    return h @ params["w4"].T + params["b4"]


if __name__ == "__main__":
    observation_size = 16
    fc_dims = 32
    n_actions = 4

    key = jax.random.PRNGKey(0)
    key, kx1, kx2 = jax.random.split(key, 3)
    params = init_params(key, observation_size, fc_dims, n_actions)

    prepped_f32 = prepare_params(params, compute_dtype=jnp.float32)
    prepped_bf16 = prepare_params(params, compute_dtype=jnp.bfloat16)

    # Small-batch / latency path (single grid step): exact match vs. reference.
    # (At this size the call is launch/DMA-latency bound; batch requests to go faster.)
    x_small = jax.random.normal(kx1, (8, observation_size), jnp.float32)
    ref_small = dqn_reference(x_small, params)
    out_small = jax.block_until_ready(dqn_forward(x_small, prepped_f32))
    assert out_small.shape == (8, n_actions)
    assert jnp.allclose(out_small, ref_small, atol=1e-5, rtol=1e-5)

    # Larger, non-tile-multiple batch: exercises multi-step grid + batch padding.
    x_big = jax.random.normal(kx2, (300, observation_size), jnp.float32)
    ref_big = dqn_reference(x_big, params)
    out_big = jax.block_until_ready(dqn_forward(x_big, prepped_f32))
    assert out_big.shape == (300, n_actions)
    assert jnp.allclose(out_big, ref_big, atol=1e-4, rtol=1e-4)

    # bf16-weight path: halves resident-weight VMEM / HBM bytes, f32 MXU accumulation.
    out_bf16 = jax.block_until_ready(dqn_forward(x_big, prepped_bf16))
    assert out_bf16.shape == (300, n_actions)
    assert jnp.allclose(out_bf16, ref_big, atol=1e-1, rtol=1e-1)

    print("KERNEL_OK")
</pallas_src>

<mosaic_0001>
module attributes {stable_mosaic.version = 11 : i64} {
  func.func @dqn_kernel(%arg0: i32, %arg1: memref<8x16xf32, #tpu.memory_space<vmem>>, %arg2: memref<16x128xf32, #tpu.memory_space<vmem>>, %arg3: memref<1x128xf32, #tpu.memory_space<vmem>>, %arg4: memref<128x128xf32, #tpu.memory_space<vmem>>, %arg5: memref<1x128xf32, #tpu.memory_space<vmem>>, %arg6: memref<128x128xf32, #tpu.memory_space<vmem>>, %arg7: memref<1x128xf32, #tpu.memory_space<vmem>>, %arg8: memref<128x4xf32, #tpu.memory_space<vmem>>, %arg9: memref<1x4xf32, #tpu.memory_space<vmem>>, %arg10: memref<8x4xf32, #tpu.memory_space<vmem>>) attributes {dimension_semantics = [#tpu.dimension_semantics<parallel>], iteration_bounds = array<i64: 1>, scalar_prefetch = 0 : i64, scratch_operands = 0 : i64, tpu.core_type = #tpu.core_type<tc>, window_params = [{transform_indices = @transform_0, window_bounds = array<i64: 8, 16>}, {pipeline_mode = #tpu.pipeline_mode<synchronous>, transform_indices = @transform_1, window_bounds = array<i64: 16, 128>}, {pipeline_mode = #tpu.pipeline_mode<synchronous>, transform_indices = @transform_2, window_bounds = array<i64: 1, 128>}, {pipeline_mode = #tpu.pipeline_mode<synchronous>, transform_indices = @transform_3, window_bounds = array<i64: 128, 128>}, {pipeline_mode = #tpu.pipeline_mode<synchronous>, transform_indices = @transform_4, window_bounds = array<i64: 1, 128>}, {pipeline_mode = #tpu.pipeline_mode<synchronous>, transform_indices = @transform_5, window_bounds = array<i64: 128, 128>}, {pipeline_mode = #tpu.pipeline_mode<synchronous>, transform_indices = @transform_6, window_bounds = array<i64: 1, 128>}, {pipeline_mode = #tpu.pipeline_mode<synchronous>, transform_indices = @transform_7, window_bounds = array<i64: 128, 4>}, {pipeline_mode = #tpu.pipeline_mode<synchronous>, transform_indices = @transform_8, window_bounds = array<i64: 1, 4>}, {transform_indices = @transform_9, window_bounds = array<i64: 8, 4>}]} {
    %c0 = arith.constant 0 : index
    %c0_0 = arith.constant 0 : index
    %0 = vector.load %arg1[%c0, %c0_0] : memref<8x16xf32, #tpu.memory_space<vmem>>, vector<8x16xf32>
    %c0_1 = arith.constant 0 : index
    %c0_2 = arith.constant 0 : index
    %1 = vector.load %arg2[%c0_1, %c0_2] : memref<16x128xf32, #tpu.memory_space<vmem>>, vector<16x128xf32>
    %cst = arith.constant dense<0.000000e+00> : vector<8x128xf32>
    %2 = tpu.matmul %0, %1, %cst {dimension_numbers = #tpu.dot_dimension_numbers<[1], [0], [0], [1], [0, 0, 1, 1], [], []>} : vector<8x16xf32>, vector<16x128xf32>, vector<8x128xf32> -> vector<8x128xf32>
    %c0_3 = arith.constant 0 : index
    %c0_4 = arith.constant 0 : index
    %3 = vector.load %arg3[%c0_3, %c0_4] : memref<1x128xf32, #tpu.memory_space<vmem>>, vector<1x128xf32>
    %4 = vector.broadcast %3 : vector<1x128xf32> to vector<8x128xf32>
    %5 = arith.addf %2, %4 : vector<8x128xf32>
    %cst_5 = arith.constant 0.000000e+00 : f32
    %6 = vector.broadcast %cst_5 : f32 to vector<8x128xf32>
    %7 = arith.maximumf %5, %6 : vector<8x128xf32>
    %c0_6 = arith.constant 0 : index
    %c0_7 = arith.constant 0 : index
    %8 = vector.load %arg4[%c0_6, %c0_7] : memref<128x128xf32, #tpu.memory_space<vmem>>, vector<128x128xf32>
    %cst_8 = arith.constant dense<0.000000e+00> : vector<8x128xf32>
    %9 = tpu.matmul %7, %8, %cst_8 {dimension_numbers = #tpu.dot_dimension_numbers<[1], [0], [0], [1], [0, 0, 1, 1], [], []>} : vector<8x128xf32>, vector<128x128xf32>, vector<8x128xf32> -> vector<8x128xf32>
    %c0_9 = arith.constant 0 : index
    %c0_10 = arith.constant 0 : index
    %10 = vector.load %arg5[%c0_9, %c0_10] : memref<1x128xf32, #tpu.memory_space<vmem>>, vector<1x128xf32>
    %11 = vector.broadcast %10 : vector<1x128xf32> to vector<8x128xf32>
    %12 = arith.addf %9, %11 : vector<8x128xf32>
    %cst_11 = arith.constant 0.000000e+00 : f32
    %13 = vector.broadcast %cst_11 : f32 to vector<8x128xf32>
    %14 = arith.maximumf %12, %13 : vector<8x128xf32>
    %c0_12 = arith.constant 0 : index
    %c0_13 = arith.constant 0 : index
    %15 = vector.load %arg6[%c0_12, %c0_13] : memref<128x128xf32, #tpu.memory_space<vmem>>, vector<128x128xf32>
    %cst_14 = arith.constant dense<0.000000e+00> : vector<8x128xf32>
    %16 = tpu.matmul %14, %15, %cst_14 {dimension_numbers = #tpu.dot_dimension_numbers<[1], [0], [0], [1], [0, 0, 1, 1], [], []>} : vector<8x128xf32>, vector<128x128xf32>, vector<8x128xf32> -> vector<8x128xf32>
    %c0_15 = arith.constant 0 : index
    %c0_16 = arith.constant 0 : index
    %17 = vector.load %arg7[%c0_15, %c0_16] : memref<1x128xf32, #tpu.memory_space<vmem>>, vector<1x128xf32>
    %18 = vector.broadcast %17 : vector<1x128xf32> to vector<8x128xf32>
    %19 = arith.addf %16, %18 : vector<8x128xf32>
    %cst_17 = arith.constant 0.000000e+00 : f32
    %20 = vector.broadcast %cst_17 : f32 to vector<8x128xf32>
    %21 = arith.maximumf %19, %20 : vector<8x128xf32>
    %c0_18 = arith.constant 0 : index
    %c0_19 = arith.constant 0 : index
    %22 = vector.load %arg8[%c0_18, %c0_19] : memref<128x4xf32, #tpu.memory_space<vmem>>, vector<128x4xf32>
    %cst_20 = arith.constant dense<0.000000e+00> : vector<8x4xf32>
    %23 = tpu.matmul %21, %22, %cst_20 {dimension_numbers = #tpu.dot_dimension_numbers<[1], [0], [0], [1], [0, 0, 1, 1], [], []>} : vector<8x128xf32>, vector<128x4xf32>, vector<8x4xf32> -> vector<8x4xf32>
    %c0_21 = arith.constant 0 : index
    %c0_22 = arith.constant 0 : index
    %24 = vector.load %arg9[%c0_21, %c0_22] : memref<1x4xf32, #tpu.memory_space<vmem>>, vector<1x4xf32>
    %25 = vector.broadcast %24 : vector<1x4xf32> to vector<8x4xf32>
    %26 = arith.addf %23, %25 : vector<8x4xf32>
    %c0_23 = arith.constant 0 : index
    %c0_24 = arith.constant 0 : index
    %27 = vector.load %arg10[%c0_23, %c0_24] : memref<8x4xf32, #tpu.memory_space<vmem>>, vector<8x4xf32>
    tpu.vector_store %arg10[%c0_23, %c0_24], %26 {strides = array<i32>} : memref<8x4xf32, #tpu.memory_space<vmem>>, vector<8x4xf32>,
    return
  }
  func.func @transform_0(%arg0: i32) -> (i32, i32) {
    %c0_i32 = arith.constant 0 : i32
    %c0_i32_0 = arith.constant 0 : i32
    return %arg0, %c0_i32 : i32, i32
  }
  func.func @transform_1(%arg0: i32) -> (i32, i32) {
    %c0_i32 = arith.constant 0 : i32
    %c0_i32_0 = arith.constant 0 : i32
    %c0_i32_1 = arith.constant 0 : i32
    return %c0_i32, %c0_i32_0 : i32, i32
  }
  func.func @transform_2(%arg0: i32) -> (i32, i32) {
    %c0_i32 = arith.constant 0 : i32
    %c0_i32_0 = arith.constant 0 : i32
    %c0_i32_1 = arith.constant 0 : i32
    return %c0_i32, %c0_i32_0 : i32, i32
  }
  func.func @transform_3(%arg0: i32) -> (i32, i32) {
    %c0_i32 = arith.constant 0 : i32
    %c0_i32_0 = arith.constant 0 : i32
    %c0_i32_1 = arith.constant 0 : i32
    return %c0_i32, %c0_i32_0 : i32, i32
  }
  func.func @transform_4(%arg0: i32) -> (i32, i32) {
    %c0_i32 = arith.constant 0 : i32
    %c0_i32_0 = arith.constant 0 : i32
    %c0_i32_1 = arith.constant 0 : i32
    return %c0_i32, %c0_i32_0 : i32, i32
  }
  func.func @transform_5(%arg0: i32) -> (i32, i32) {
    %c0_i32 = arith.constant 0 : i32
    %c0_i32_0 = arith.constant 0 : i32
    %c0_i32_1 = arith.constant 0 : i32
    return %c0_i32, %c0_i32_0 : i32, i32
  }
  func.func @transform_6(%arg0: i32) -> (i32, i32) {
    %c0_i32 = arith.constant 0 : i32
    %c0_i32_0 = arith.constant 0 : i32
    %c0_i32_1 = arith.constant 0 : i32
    return %c0_i32, %c0_i32_0 : i32, i32
  }
  func.func @transform_7(%arg0: i32) -> (i32, i32) {
    %c0_i32 = arith.constant 0 : i32
    %c0_i32_0 = arith.constant 0 : i32
    %c0_i32_1 = arith.constant 0 : i32
    return %c0_i32, %c0_i32_0 : i32, i32
  }
  func.func @transform_8(%arg0: i32) -> (i32, i32) {
    %c0_i32 = arith.constant 0 : i32
    %c0_i32_0 = arith.constant 0 : i32
    %c0_i32_1 = arith.constant 0 : i32
    return %c0_i32, %c0_i32_0 : i32, i32
  }
  func.func @transform_9(%arg0: i32) -> (i32, i32) {
    %c0_i32 = arith.constant 0 : i32
    %c0_i32_0 = arith.constant 0 : i32
    return %arg0, %c0_i32 : i32, i32
  }
}

</mosaic_0001>

<bundles_post_ra>
// kernel: dqn_forward.1
= control target key start
LH: loop header
LB: loop body
LE: loop exit
PB: predicated region body
PF: predicated region fallthrough
CT: control target
= control target key end

     0   :  { %14 = vsyncpa [#allocation3], 0  ;;  %s582_s0 = inlined_call_operand.vmem [shape: f32[8,16], index: 0, kind: input, shape index: {}]   ;;  %s583_s1 = inlined_call_operand.hbm [shape: f32[16,128], index: 1, kind: input, shape index: {}]   ;;  %s584_s2 = inlined_call_operand.vmem [shape: f32[1,128], index: 2, kind: input, shape index: {}]   ;;  %s585_s3 = inlined_call_operand.vmem [shape: f32[128,128], index: 3, kind: input, shape index: {}]   ;;  %s586_s4 = inlined_call_operand.hbm [shape: f32[1,128], index: 4, kind: input, shape index: {}]   ;;  %s587_s5 = inlined_call_operand.hbm [shape: f32[128,128], index: 5, kind: input, shape index: {}]   ;;  %s588_s6 = inlined_call_operand.hbm [shape: f32[1,128], index: 6, kind: input, shape index: {}]   ;;  %s589_s7 = inlined_call_operand.vmem [shape: f32[128,4], index: 7, kind: input, shape index: {}]   ;;  %s590_s8 = inlined_call_operand.hbm [shape: f32[1,4], index: 8, kind: input, shape index: {}]   ;;  %s591_s9 = inlined_call_operand.vmem [shape: f32[8,4], index: 9, kind: output, shape index: {}]  }
   0x1   :  { %15 = vsyncpa [#allocation5], 0  ;;  %s41_s11 = sshll.u32 %s586_s4, 4  ;;  %s42_s11 = int_to_ptr.hbm [resolvable:$true] %s41_s11 }
   0x2   :  { %16 = vsyncpa [#allocation8], 0  ;;  %s405_s12 = smov [#allocation4]   ;;  %s65_s16 = sshll.u32 %s588_s6, 4  ;;  %s66_s16 = int_to_ptr.hbm [resolvable:$true] %s65_s16 }
   0x3   :  { %s43_s13 = sshll.u32 %s405_s12, 4  ;;  %s406_s17 = smov [#allocation7]   ;;  %s44_s13 = int_to_ptr.vmem [resolvable:$true] %s43_s13 }
   0x4   :  { %46 = dma.hbm_to_vmem [thread:$0]  %s42_s11, 16, %s44_s13, [#allocation5]  }
   0x5   :  { %s67_s18 = sshll.u32 %s406_s17, 4  ;;  %s23_s21 = sshll.u32 %s583_s1, 4  ;;  %s68_s18 = int_to_ptr.vmem [resolvable:$true] %s67_s18  ;;  %s24_s21 = int_to_ptr.hbm [resolvable:$true] %s23_s21 }
   0x6   :  { %70 = dma.hbm_to_vmem [thread:$0]  %s66_s16, 16, %s68_s18, [#allocation8]  }
   0x7   :  { %s407_s4 = smov [#allocation2]   ;;  %s51_s25 = sshll.u32 %s587_s5, 4  ;;  %s52_s25 = int_to_ptr.hbm [resolvable:$true] %s51_s25 }
   0x8   :  { %s25_s22 = sshll.u32 %s407_s4, 4  ;;  %s408_s26 = smov 128   ;;  %s26_s22 = int_to_ptr.vmem [resolvable:$true] %s25_s22 }
   0x9   :  { %s409_s6 = smov 8   ;;  %s410_s27 = smov [#allocation6]  }
   0xa   :  { %31 = dma.hbm_to_vmem [thread:$0]  %s24_s21, 256, %s26_s22, [#allocation3], %s408_s26, %s408_s26, %s409_s6  }
   0xb   :  { %s53_s28 = sshll.u32 %s410_s27, 4  ;;  %s78_s1 = sshll.u32 %s590_s8, 4  ;;  %s54_s28 = int_to_ptr.vmem [resolvable:$true] %s53_s28  ;;  %s79_s1 = int_to_ptr.hbm [resolvable:$true] %s78_s1 }
   0xc   :  { %59 = dma.hbm_to_vmem [thread:$0]  %s52_s25, 2048, %s54_s28, [#allocation5], %s408_s26, %s408_s26, %s409_s6  }
   0xd   :  { %s411_s10 = smov [#allocation9]  }
   0xe   :  { %s80_s11 = sshll.u32 %s411_s10, 4  ;;  %s81_s11 = int_to_ptr.vmem [resolvable:$true] %s80_s11 }
   0xf   :  { %83 = dma.hbm_to_vmem [thread:$0]  %s79_s1, 16, %s81_s11, [#allocation8]  }
  0x10   :  { %399 = dma.done.wait [#allocation3], 256  }
  0x11   :  { %400 = vsyncadd [#allocation3], 4294967040 }
  0x12   :  { %401 = dma.done.wait [#allocation5], 2064  }
  0x13   :  { %402 = vsyncadd [#allocation5], 4294965232 }
  0x14   :  { %403 = dma.done.wait [#allocation8], 32  }
  0x15   :  { %404 = vsyncadd [#allocation8], 4294967264  ;;  %v106_v0 = vld [vmem:[#allocation2 + $0x8] sm:$0xff]  ;;  %v105_v1 = vld [vmem:[#allocation2] sm:$0xff]  ;;  %vm111_vm0 = vcmask 130048   ;;  %vm258_vm1 = vcmask 31744  }
  0x16   :  { %129 = vmatpush.msra.mxu0 %v106_v0  ;;  %v104_v2 = vld [vmem:[%s582_s0] sm:$0xff]  ;;  %v151_v3 = vld [vmem:[%s585_s3 + $0x78] sm:$0xff]  ;;  %v150_v4 = vld [vmem:[%s585_s3 + $0x70] sm:$0xff] }
  0x17   :  { %156 = vmatpush.msra.mxu1 %v151_v3  ;;  %v149_v5 = vld [vmem:[%s585_s3 + $0x68] sm:$0xff]  ;;  %v148_v6 = vld [vmem:[%s585_s3 + $0x60] sm:$0xff]  ;;  %v147_v7 = vld [vmem:[%s585_s3 + $0x58] sm:$0xff] }
  0x18   :  { %130 = vmatpush.msra.mxu0 %v105_v1  ;;  %v146_v8 = vld [vmem:[%s585_s3 + $0x50] sm:$0xff]  ;;  %v145_v9 = vld [vmem:[%s585_s3 + $0x48] sm:$0xff]  ;;  %v144_v10 = vld [vmem:[%s585_s3 + $0x40] sm:$0xff] }
  0x19   :  { %267 = vmatmul.msk.f32.vlgmr.msra.gmra.mxu0 %vm111_vm0, %v104_v2  ;;  %157 = vmatpush.msra.mxu1 %v150_v4  ;;  %v143_v11 = vld [vmem:[%s585_s3 + $0x38] sm:$0xff]  ;;  %v142_v12 = vld [vmem:[%s585_s3 + $0x30] sm:$0xff]  ;;  %v141_v13 = vld [vmem:[%s585_s3 + $0x28] sm:$0xff] }
  0x1a   :  { %v140_v14 = vld [vmem:[%s585_s3 + $0x20] sm:$0xff]  ;;  %v139_v15 = vld [vmem:[%s585_s3 + $0x18] sm:$0xff]  ;;  %v138_v16 = vld [vmem:[%s585_s3 + $0x10] sm:$0xff] }
  0x1b   :  { %158 = vmatpush.msra.mxu1 %v149_v5  ;;  %v137_v17 = vld [vmem:[%s585_s3 + $0x8] sm:$0xff]  ;;  %v136_v18 = vld [vmem:[%s585_s3] sm:$0xff]  ;;  %v189_v22 = vld [vmem:[#allocation6 + $0x60] sm:$0xff] }
  0x1c   :  { %v192_v19 = vld [vmem:[#allocation6 + $0x78] sm:$0xff]  ;;  %v191_v20 = vld [vmem:[#allocation6 + $0x70] sm:$0xff]  ;;  %v190_v21 = vld [vmem:[#allocation6 + $0x68] sm:$0xff] }
  0x1d   :  { %159 = vmatpush.msra.mxu1 %v148_v6  ;;  %197 = vmatpush.msra.mxu2 %v192_v19  ;;  %v188_v23 = vld [vmem:[#allocation6 + $0x58] sm:$0xff]  ;;  %v187_v24 = vld [vmem:[#allocation6 + $0x50] sm:$0xff]  ;;  %v186_v25 = vld [vmem:[#allocation6 + $0x48] sm:$0xff] }
  0x1e   :  { %v185_v26 = vld [vmem:[#allocation6 + $0x40] sm:$0xff]  ;;  %v184_v27 = vld [vmem:[#allocation6 + $0x38] sm:$0xff]  ;;  %v183_v28 = vld [vmem:[#allocation6 + $0x30] sm:$0xff] }
  0x1f   :  { %160 = vmatpush.msra.mxu1 %v147_v7  ;;  %198 = vmatpush.msra.mxu2 %v191_v20  ;;  %v182_v29 = vld [vmem:[#allocation6 + $0x28] sm:$0xff]  ;;  %v181_v30 = vld [vmem:[#allocation6 + $0x20] sm:$0xff]  ;;  %v180_v31 = vld [vmem:[#allocation6 + $0x18] sm:$0xff] }
  0x20   :  { %v275_v32 = vld [vmem:[%s584_s2] ss:$0 sm:$0xff]  ;;  %v179_v36 = vld [vmem:[#allocation6 + $0x10] sm:$0xff]  ;;  %v177_v38 = vld [vmem:[#allocation6] sm:$0xff] }
  0x21   :  { %161 = vmatpush.msra.mxu1 %v146_v8  ;;  %199 = vmatpush.msra.mxu2 %v190_v21  ;;  %v178_v37 = vld [vmem:[#allocation6 + $0x8] sm:$0xff]  ;;  %v232_v40 = vld [vmem:[%s589_s7 + $0x70] sm:$0xff]  ;;  %v231_v41 = vld [vmem:[%s589_s7 + $0x68] sm:$0xff] }
  0x22   :  { %v233_v39 = vld [vmem:[%s589_s7 + $0x78] sm:$0xff]  ;;  %v230_v42 = vld [vmem:[%s589_s7 + $0x60] sm:$0xff]  ;;  %v228_v44 = vld [vmem:[%s589_s7 + $0x50] sm:$0xff] }
  0x23   :  { %162 = vmatpush.msra.mxu1 %v145_v9  ;;  %200 = vmatpush.msra.mxu2 %v189_v22  ;;  %v229_v43 = vld [vmem:[%s589_s7 + $0x58] sm:$0xff]  ;;  %v227_v45 = vld [vmem:[%s589_s7 + $0x48] sm:$0xff]  ;;  %v226_v46 = vld [vmem:[%s589_s7 + $0x40] sm:$0xff] }
  0x24   :  { %238 = vmatpush.msra.mxu3 %v233_v39  ;;  %v225_v47 = vld [vmem:[%s589_s7 + $0x38] sm:$0xff]  ;;  %v224_v48 = vld [vmem:[%s589_s7 + $0x30] sm:$0xff]  ;;  %v223_v49 = vld [vmem:[%s589_s7 + $0x28] sm:$0xff] }
  0x25   :  { %163 = vmatpush.msra.mxu1 %v144_v10  ;;  %201 = vmatpush.msra.mxu2 %v188_v23  ;;  %v222_v50 = vld [vmem:[%s589_s7 + $0x20] sm:$0xff]  ;;  %v221_v51 = vld [vmem:[%s589_s7 + $0x18] sm:$0xff]  ;;  %v276_v52 = vld [vmem:[#allocation4] ss:$0 sm:$0xff] }
  0x26   :  { %239 = vmatpush.msra.mxu3 %v232_v40  ;;  %v220_v56 = vld [vmem:[%s589_s7 + $0x10] sm:$0xff]  ;;  %v219_v57 = vld [vmem:[%s589_s7 + $0x8] sm:$0xff]  ;;  %v218_v58 = vld [vmem:[%s589_s7] sm:$0xff] }
  0x27   :  { %164 = vmatpush.msra.mxu1 %v143_v11  ;;  %202 = vmatpush.msra.mxu2 %v187_v24  ;;  %v277_v59 = vld [vmem:[#allocation7] ss:$0 sm:$0xff]  ;;  %v278_v63 = vld [vmem:[#allocation9] ss:$0 sm:$0xff] }
  0x28   :  { %240 = vmatpush.msra.mxu3 %v231_v41 }
  0x29   :  { %165 = vmatpush.msra.mxu1 %v142_v12  ;;  %203 = vmatpush.msra.mxu2 %v186_v25 }
  0x2a   :  { %241 = vmatpush.msra.mxu3 %v230_v42 }
  0x2b   :  { %166 = vmatpush.msra.mxu1 %v141_v13  ;;  %204 = vmatpush.msra.mxu2 %v185_v26 }
  0x2c   :  { %242 = vmatpush.msra.mxu3 %v229_v43 }
  0x2d   :  { %167 = vmatpush.msra.mxu1 %v140_v14  ;;  %205 = vmatpush.msra.mxu2 %v184_v27 }
  0x2e   :  { %243 = vmatpush.msra.mxu3 %v228_v44 }
  0x2f   :  { %168 = vmatpush.msra.mxu1 %v139_v15  ;;  %206 = vmatpush.msra.mxu2 %v183_v28 }
  0x30   :  { %244 = vmatpush.msra.mxu3 %v227_v45 }
  0x31   :  { %169 = vmatpush.msra.mxu1 %v138_v16  ;;  %207 = vmatpush.msra.mxu2 %v182_v29 }
  0x32   :  { %245 = vmatpush.msra.mxu3 %v226_v46 }
  0x33   :  { %170 = vmatpush.msra.mxu1 %v137_v17  ;;  %208 = vmatpush.msra.mxu2 %v181_v30 }
  0x34   :  { %246 = vmatpush.msra.mxu3 %v225_v47 }
  0x35   :  { %171 = vmatpush.msra.mxu1 %v136_v18  ;;  %209 = vmatpush.msra.mxu2 %v180_v31 }
  0x36   :  { %247 = vmatpush.msra.mxu3 %v224_v48 }
  0x37   :  { %210 = vmatpush.msra.mxu2 %v179_v36 }
  0x38   :  { %248 = vmatpush.msra.mxu3 %v223_v49 }
  0x39   :  { %211 = vmatpush.msra.mxu2 %v178_v37 }
  0x3a   :  { %249 = vmatpush.msra.mxu3 %v222_v50 }
  0x3b   :  { %212 = vmatpush.msra.mxu2 %v177_v38 }
  0x3c   :  { %250 = vmatpush.msra.mxu3 %v221_v51 }
  0x3e   :  { %251 = vmatpush.msra.mxu3 %v220_v56 }
  0x40   :  { %252 = vmatpush.msra.mxu3 %v219_v57 }
  0x42   :  { %253 = vmatpush.msra.mxu3 %v218_v58 }
  0x96   :  { %v132_v33 = vpop.f32.mrf.mxu0 }
  0x97   :  { %v133_v34 = vadd.f32 %v275_v32, %v132_v33 }
  0x99   :  { %v135_v35 = vmax.f32 %v133_v34, 0.0 }
  0x9b   :  { %172 = vmatmul.f32.vlgmr.msra.gmra.mxu1 %v135_v35 }
 0x118   :  { %v173_v53 = vpop.f32.mrf.mxu1 }
 0x119   :  { %v174_v54 = vadd.f32 %v276_v52, %v173_v53 }
 0x11b   :  { %v176_v55 = vmax.f32 %v174_v54, 0.0 }
 0x11d   :  { %213 = vmatmul.f32.vlgmr.msra.gmra.mxu2 %v176_v55 }
 0x1a0   :  { %v214_v60 = vpop.f32.mrf.mxu2 }
 0x1a1   :  { %v215_v61 = vadd.f32 %v277_v59, %v214_v60 }
 0x1a3   :  { %v217_v62 = vmax.f32 %v215_v61, 0.0 }
 0x1a5   :  { %254 = vmatmul.f32.vlgmr.msra.gmra.mxu3 %v217_v62 }
 0x228   :  { %v255_v0 = vpop.f32.mrf.mxu3 }
 0x229   :  { %v256_v1 = vadd.f32 %v278_v63, %v255_v0 }
 0x22b   :  { %259 = vst.msk [vmem:[%s591_s9] sm:$0xff] %vm258_vm1, %v256_v1 }
 0x22c   :  { %264 = vsyncpa [#allocation3], 1 }
 0x22d   :  { %265 = vsyncpa [#allocation5], 1 }
 0x22e   :  { %266 = vsyncpa [#allocation8], 1 }

</bundles_post_ra>
